<compile_context>
chip_gen: v5e
topology: v5e:2x2
jax: 0.10.0
libtpu: 0.0.40
codegen_flags: <defaults>
</compile_context>

<pallas_src>
import functools

import jax
import jax.numpy as jnp
from jax import lax
from jax.experimental import pallas as pl
from jax.experimental.pallas import tpu as pltpu

_VMEM_LIMIT_BYTES = 64 * 1024 * 1024


# ----------------------------- tiling helpers ------------------------------ #

def _pick_m_tile(m, target):
    """Largest divisor of m that is <= target and a multiple of 8 (else m)."""
    if target >= m:
        return m
    for cand in range(min(target, m), 7, -1):
        if m % cand == 0 and cand % 8 == 0:
            return cand
    return m


def _pick_h_tile(h, w, cin, cout, budget_bytes=2 * 1024 * 1024):
    """Largest row tile TH dividing h (with TH*w a multiple of 8, or TH == h)
    whose halo'd input window fits the per-buffer VMEM budget."""
    row_bytes = (w + 2) * max(cin, cout) * 4
    best = h
    for th in range(h, 0, -1):
        if h % th:
            continue
        if th != h and (th * w) % 8:
            continue
        best = th
        if (th + 2) * row_bytes <= budget_bytes:
            return th
    return best


# ------------------------------- 1x1 conv ---------------------------------- #

def _conv1x1_kernel(x_ref, w_ref, b_ref, o_ref):
    o_ref[...] = (jnp.dot(x_ref[...], w_ref[...],
                          preferred_element_type=jnp.float32)
                  + b_ref[...]).astype(o_ref.dtype)


def conv1x1(x, w, b, *, m_tile=None):
    """Pointwise conv.  x: (B,H,W,Cin) NHWC, w: (Cin,Cout), b: (Cout,)."""
    B, H, W, cin = x.shape
    cout = w.shape[1]
    m = B * H * W
    tm = _pick_m_tile(m, m_tile or 4096)
    out = pl.pallas_call(
        _conv1x1_kernel,
        out_shape=jax.ShapeDtypeStruct((m, cout), x.dtype),
        grid=(m // tm,),
        in_specs=[pl.BlockSpec((tm, cin), lambda i: (i, 0)),
                  pl.BlockSpec((cin, cout), lambda i: (0, 0)),
                  pl.BlockSpec((1, cout), lambda i: (0, 0))],
        out_specs=pl.BlockSpec((tm, cout), lambda i: (i, 0)),
        compiler_params=pltpu.CompilerParams(
            dimension_semantics=("parallel",)),
    )(x.reshape(m, cin), w, b.reshape(1, cout))
    return out.reshape(B, H, W, cout)


# --------------------- 3x3 conv (+ fused ResNet shortcut) ------------------- #

def _make_conv3x3_kernel(th, w_out, cin, mode):
    """3x3 conv over one (batch, row-tile) grid cell.

    Manual halo DMA: a (th+2, w+2, cin) window of the padded input is copied
    HBM->VMEM into a double buffer (prefetching the next window).  The 9 taps
    are concatenated along channels and contracted in one K=9*cin matmul.
    mode: "none" | "add" (identity shortcut) | "proj" (1x1-projected shortcut).
    """

    def kernel(*refs):
        if mode == "none":
            x_hbm, w_ref, b_ref, o_ref, buf, sem = refs
        elif mode == "add":
            x_hbm, w_ref, b_ref, res_ref, o_ref, buf, sem = refs
        else:  # "proj"
            x_hbm, w_ref, b_ref, res_ref, scw_ref, scb_ref, o_ref, buf, sem = refs

        bi = pl.program_id(0)
        r = pl.program_id(1)
        nr = pl.num_programs(1)

        def window_copy(row_tile, slot):
            return pltpu.make_async_copy(
                x_hbm.at[bi, pl.ds(row_tile * th, th + 2)],
                buf.at[slot], sem.at[slot])

        @pl.when(r == 0)                      # prime the pipeline (per batch)
        def _():
            window_copy(0, 0).start()

        slot = lax.rem(r, 2)
        window_copy(r, slot).wait()

        @pl.when(r + 1 < nr)                  # prefetch next row tile
        def _():
            window_copy(r + 1, 1 - slot).start()

        # im2col inside VMEM: 9 shifted views -> (th*w, 9*cin), single matmul.
        parts = [buf[slot, dy:dy + th, dx:dx + w_out, :].reshape(th * w_out, cin)
                 for dy in range(3) for dx in range(3)]
        patches = jnp.concatenate(parts, axis=-1)
        acc = jnp.dot(patches, w_ref[...], preferred_element_type=jnp.float32)
        acc = acc + b_ref[...]
        if mode == "add":
            acc = acc + res_ref[0].astype(jnp.float32)
        elif mode == "proj":
            acc = acc + jnp.dot(res_ref[0], scw_ref[...],
                                preferred_element_type=jnp.float32) + scb_ref[...]
        o_ref[0] = acc.astype(o_ref.dtype)

    return kernel


def conv3x3(x, w, b, *, residual=None, sc_w=None, sc_b=None, h_tile=None):
    """3x3 'same' conv with optionally fused ResNet shortcut.

    x: (B,H,W,Cin), w: (3,3,Cin,Cout), b: (Cout,).
    residual: (B,H,W,Cr) added to the output; if sc_w/sc_b are given the
    residual is first projected with a fused 1x1 conv (Cr -> Cout)."""
    B, H, W, cin = x.shape
    cout = w.shape[-1]
    if h_tile and H % h_tile == 0 and (h_tile == H or (h_tile * W) % 8 == 0):
        th = h_tile
    else:
        th = _pick_h_tile(H, W, cin, cout)
    n_row_tiles = H // th

    xp = jnp.pad(x, ((0, 0), (1, 1), (1, 1), (0, 0)))     # zero 'same' padding
    wf = w.reshape(9 * cin, cout)                          # (dy, dx, ci) major

    mode = "none" if residual is None else ("proj" if sc_w is not None else "add")
    in_specs = [pl.BlockSpec(memory_space=pl.ANY),         # padded x stays in HBM
                pl.BlockSpec((9 * cin, cout), lambda b_, r_: (0, 0)),
                pl.BlockSpec((1, cout), lambda b_, r_: (0, 0))]
    args = [xp, wf, b.reshape(1, cout)]
    if residual is not None:
        cr = residual.shape[-1]
        in_specs.append(pl.BlockSpec((1, th * W, cr), lambda b_, r_: (b_, r_, 0)))
        args.append(residual.reshape(B, H * W, cr))
        if sc_w is not None:
            in_specs += [pl.BlockSpec((cr, cout), lambda b_, r_: (0, 0)),
                         pl.BlockSpec((1, cout), lambda b_, r_: (0, 0))]
            args += [sc_w, sc_b.reshape(1, cout)]

    # TODO(synk): for very wide Cout, pad channels to a multiple of 128 once
    # after conv_in so output stores are fully lane-dense.
    out = pl.pallas_call(
        _make_conv3x3_kernel(th, W, cin, mode),
        out_shape=jax.ShapeDtypeStruct((B, H * W, cout), x.dtype),
        grid=(B, n_row_tiles),
        in_specs=in_specs,
        out_specs=pl.BlockSpec((1, th * W, cout), lambda b_, r_: (b_, r_, 0)),
        scratch_shapes=[pltpu.VMEM((2, th + 2, W + 2, cin), x.dtype),
                        pltpu.SemaphoreType.DMA((2,))],
        compiler_params=pltpu.CompilerParams(
            dimension_semantics=("parallel", "arbitrary"),
            vmem_limit_bytes=_VMEM_LIMIT_BYTES),
    )(*args)
    return out.reshape(B, H, W, cout)


# -------------------------- GroupNorm + SiLU (fused) ------------------------ #

def _gn_silu_kernel(x_ref, g_ref, b_ref, gm_ref, o_ref, *, eps):
    x = x_ref[0].astype(jnp.float32)                      # (HW, C)
    s = jnp.sum(x, axis=0, keepdims=True)                 # (1, C)
    ss = jnp.sum(x * x, axis=0, keepdims=True)            # (1, C)
    # Group pooling of the stats via a tiny (C,C) matmul (gm already folds in
    # 1/(HW*C_per_group)): every channel receives its group's mean / E[x^2].
    mean = jnp.dot(s, gm_ref[...], preferred_element_type=jnp.float32,
                   precision=lax.Precision.HIGHEST)
    ex2 = jnp.dot(ss, gm_ref[...], preferred_element_type=jnp.float32,
                  precision=lax.Precision.HIGHEST)
    var = ex2 - mean * mean                               # biased variance
    scale = g_ref[...] * lax.rsqrt(var + eps)
    shift = b_ref[...] - mean * scale
    y = x * scale + shift
    o_ref[0] = (y * jax.nn.sigmoid(y)).astype(o_ref.dtype)   # SiLU


def groupnorm_silu(x, gamma, beta, groups, eps=1e-6):
    """GroupNorm (per (batch, group), biased var) fused with SiLU; one grid
    step per batch element, single lane-dense pass."""
    # TODO(synk): for very large H*W (v7x 64 MiB VMEM) switch to a two-pass
    # (partial stats, then normalize) kernel tiled over the H*W axis.
    B, H, W, C = x.shape
    hw = H * W
    cg = C // groups
    gidx = jnp.arange(C) // cg
    gmat = (gidx[:, None] == gidx[None, :]).astype(jnp.float32) / float(hw * cg)
    out = pl.pallas_call(
        functools.partial(_gn_silu_kernel, eps=eps),
        out_shape=jax.ShapeDtypeStruct((B, hw, C), x.dtype),
        grid=(B,),
        in_specs=[pl.BlockSpec((1, hw, C), lambda i: (i, 0, 0)),
                  pl.BlockSpec((1, C), lambda i: (0, 0)),
                  pl.BlockSpec((1, C), lambda i: (0, 0)),
                  pl.BlockSpec((C, C), lambda i: (0, 0))],
        out_specs=pl.BlockSpec((1, hw, C), lambda i: (i, 0, 0)),
        compiler_params=pltpu.CompilerParams(
            dimension_semantics=("parallel",),
            vmem_limit_bytes=_VMEM_LIMIT_BYTES),
    )(x.reshape(B, hw, C), gamma.reshape(1, C).astype(jnp.float32),
      beta.reshape(1, C).astype(jnp.float32), gmat)
    return out.reshape(B, H, W, C)


# ------------------------------ 2x2 avg pool -------------------------------- #

def _make_avgpool_kernel(c):
    def kernel(x_ref, o_ref):
        # block: (1, THo, 2, Wo, 2*C); 2x2 window gathered in-kernel.
        top = x_ref[0, :, 0, :, :].astype(jnp.float32)    # (THo, Wo, 2C)
        bot = x_ref[0, :, 1, :, :].astype(jnp.float32)
        s = top[:, :, :c] + top[:, :, c:] + bot[:, :, :c] + bot[:, :, c:]
        o_ref[0] = (0.25 * s).astype(o_ref.dtype)
    return kernel


def avgpool2x2(x, *, h_tile=None):
    """AvgPool2d(kernel=2, stride=2) on NHWC (H, W even).  Only free row-major
    reshapes happen outside the kernel."""
    B, H, W, C = x.shape
    Ho, Wo = H // 2, W // 2
    tho = h_tile if (h_tile and 0 < h_tile <= Ho and Ho % h_tile == 0) else Ho
    xv = x.reshape(B, Ho, 2, Wo, 2 * C)                   # pure metadata reshape
    out = pl.pallas_call(
        _make_avgpool_kernel(C),
        out_shape=jax.ShapeDtypeStruct((B, Ho, Wo, C), x.dtype),
        grid=(B, Ho // tho),
        in_specs=[pl.BlockSpec((1, tho, 2, Wo, 2 * C),
                               lambda b_, r_: (b_, r_, 0, 0, 0))],
        out_specs=pl.BlockSpec((1, tho, Wo, C), lambda b_, r_: (b_, r_, 0, 0)),
        compiler_params=pltpu.CompilerParams(
            dimension_semantics=("parallel", "parallel")),
    )(xv)
    return out


# ------------------------------- XLA glue ----------------------------------- #

def pixel_unshuffle(x, r):
    """nn.PixelUnshuffle: (B,C,H*r,W*r) -> (B,C*r*r,H,W)."""
    B, C, Hr, Wr = x.shape
    H, W = Hr // r, Wr // r
    x = x.reshape(B, C, H, r, W, r)
    x = x.transpose(0, 1, 3, 5, 2, 4)
    return x.reshape(B, C * r * r, H, W)


# --------------------------- params & forward pass -------------------------- #

def init_pose_encoder_params(key, downscale_factor, pose_channels, in_channels,
                             channels, groups=32):
    unshuffle_c = pose_channels * downscale_factor ** 2
    keys = iter(jax.random.split(key, 4 + 10 * len(channels)))

    def nrm(shape, scale=0.1):
        return scale * jax.random.normal(next(keys), shape, jnp.float32)

    params = {"conv_in_w": nrm((unshuffle_c, in_channels)),
              "conv_in_b": nrm((in_channels,)),
              "resnets": []}
    g = groups
    for i, cout in enumerate(channels):
        cin = in_channels if i == 0 else channels[i - 1]
        if cin % g != 0 or cout % g != 0:    # mirrors the torch module's logic
            g = 1
        rp = {"groups": g,
              "gn1_gamma": 1.0 + nrm((cin,)), "gn1_beta": nrm((cin,)),
              "conv1_w": nrm((3, 3, cin, cout)), "conv1_b": nrm((cout,)),
              "gn2_gamma": 1.0 + nrm((cout,)), "gn2_beta": nrm((cout,)),
              "conv2_w": nrm((3, 3, cout, cout)), "conv2_b": nrm((cout,))}
        if cin != cout:  # ResnetBlock2D use_in_shortcut (1x1 conv shortcut)
            rp["sc_w"] = nrm((cin, cout))
            rp["sc_b"] = nrm((cout,))
        params["resnets"].append(rp)
    return params


def pose_encoder_forward(x_nchw, params, downscale_factor, *,
                         h_tile=None, m_tile=None, features_nchw=True):
    x = pixel_unshuffle(x_nchw, downscale_factor)          # NCHW glue
    x = jnp.transpose(x, (0, 2, 3, 1))                     # -> NHWC for kernels
    x = conv1x1(x, params["conv_in_w"], params["conv_in_b"], m_tile=m_tile)
    features = []
    n = len(params["resnets"])
    for i, rp in enumerate(params["resnets"]):
        g = rp["groups"]
        # ResnetBlock2D (pre-norm, temb=None, output_scale_factor=1)
        h = groupnorm_silu(x, rp["gn1_gamma"], rp["gn1_beta"], g)
        h = conv3x3(h, rp["conv1_w"], rp["conv1_b"], h_tile=h_tile)
        h = groupnorm_silu(h, rp["gn2_gamma"], rp["gn2_beta"], g)
        if "sc_w" in rp:    # fused 1x1-projected shortcut
            x = conv3x3(h, rp["conv2_w"], rp["conv2_b"], residual=x,
                        sc_w=rp["sc_w"], sc_b=rp["sc_b"], h_tile=h_tile)
        else:               # fused identity shortcut
            x = conv3x3(h, rp["conv2_w"], rp["conv2_b"], residual=x,
                        h_tile=h_tile)
        features.append(jnp.transpose(x, (0, 3, 1, 2)) if features_nchw else x)
        if i != n - 1:                                     # Downsample2D (avg pool)
            x = avgpool2x2(x, h_tile=h_tile)
    return features


# ------------------------------ pure-JAX check ------------------------------ #

def _ref_gn_silu(x, gamma, beta, groups, eps=1e-6):
    B, H, W, C = x.shape
    xr = x.reshape(B, H * W, groups, C // groups)
    mean = xr.mean(axis=(1, 3), keepdims=True)
    var = ((xr - mean) ** 2).mean(axis=(1, 3), keepdims=True)
    y = ((xr - mean) / jnp.sqrt(var + eps)).reshape(B, H, W, C)
    y = y * gamma + beta
    return y * jax.nn.sigmoid(y)


def _ref_conv(x, w, b):
    pad = "SAME" if w.shape[0] == 3 else "VALID"
    out = lax.conv_general_dilated(
        x, w, window_strides=(1, 1), padding=pad,
        dimension_numbers=("NHWC", "HWIO", "NHWC"))
    return out + b


def _ref_forward(x_nchw, params, r):
    x = pixel_unshuffle(x_nchw, r)
    x = jnp.transpose(x, (0, 2, 3, 1))
    w_in = params["conv_in_w"]
    x = _ref_conv(x, w_in.reshape(1, 1, *w_in.shape), params["conv_in_b"])
    feats = []
    n = len(params["resnets"])
    for i, rp in enumerate(params["resnets"]):
        g = rp["groups"]
        h = _ref_gn_silu(x, rp["gn1_gamma"], rp["gn1_beta"], g)
        h = _ref_conv(h, rp["conv1_w"], rp["conv1_b"])
        h = _ref_gn_silu(h, rp["gn2_gamma"], rp["gn2_beta"], g)
        sc = (_ref_conv(x, rp["sc_w"].reshape(1, 1, *rp["sc_w"].shape), rp["sc_b"])
              if "sc_w" in rp else x)
        x = _ref_conv(h, rp["conv2_w"], rp["conv2_b"]) + sc
        feats.append(jnp.transpose(x, (0, 3, 1, 2)))
        if i != n - 1:
            B, H, W, C = x.shape
            x = x.reshape(B, H // 2, 2, W // 2, 2, C).mean(axis=(2, 4))
    return feats


# ----------------------------------- main ----------------------------------- #

if __name__ == "__main__":
    downscale_factor = 2
    pose_channels = 4
    in_channels = 16
    channels = (16, 32)
    groups = 4

    key = jax.random.PRNGKey(0)
    k_x, k_p = jax.random.split(key)
    x = jax.random.normal(k_x, (2, pose_channels, 16, 16), jnp.float32)
    params = init_pose_encoder_params(k_p, downscale_factor, pose_channels,
                                      in_channels, channels, groups)

    # Default tiling (NCHW features, torch parity).
    feats = pose_encoder_forward(x, params, downscale_factor)
    feats = jax.block_until_ready(feats)

    # Forced small tiles: exercises the multi-row-tile double-buffer path,
    # the M-tiled conv1x1 / avgpool grids, and the deferred-transpose layout.
    feats_tiled = pose_encoder_forward(x, params, downscale_factor,
                                       h_tile=2, m_tile=32, features_nchw=False)
    feats_tiled = jax.block_until_ready(feats_tiled)

    refs = _ref_forward(x, params, downscale_factor)

    def _check(got, want):
        assert got.shape == want.shape, (got.shape, want.shape)
        # Kernels use default (bf16-input / f32-accumulate) MXU precision, so
        # allow a 2% normalized tolerance vs the f32 XLA reference.
        denom = float(jnp.maximum(jnp.max(jnp.abs(want)), 1.0))
        err = float(jnp.max(jnp.abs(got - want))) / denom
        assert err < 2e-2, err

    for f, rr in zip(feats, refs):
        _check(f, rr)
    for f, rr in zip(feats_tiled, refs):
        _check(f, jnp.transpose(rr, (0, 2, 3, 1)))

    print("KERNEL_OK")
</pallas_src>

<mosaic_0001>
module attributes {stable_mosaic.version = 11 : i64} {
  func.func @_conv1x1_kernel(%arg0: i32, %arg1: memref<128x16xf32, #tpu.memory_space<vmem>>, %arg2: memref<16x16xf32, #tpu.memory_space<vmem>>, %arg3: memref<1x16xf32, #tpu.memory_space<vmem>>, %arg4: memref<128x16xf32, #tpu.memory_space<vmem>>) attributes {dimension_semantics = [#tpu.dimension_semantics<parallel>], iteration_bounds = array<i64: 1>, scalar_prefetch = 0 : i64, scratch_operands = 0 : i64, tpu.core_type = #tpu.core_type<tc>, window_params = [{transform_indices = @transform_0, window_bounds = array<i64: 128, 16>}, {pipeline_mode = #tpu.pipeline_mode<synchronous>, transform_indices = @transform_1, window_bounds = array<i64: 16, 16>}, {pipeline_mode = #tpu.pipeline_mode<synchronous>, transform_indices = @transform_2, window_bounds = array<i64: 1, 16>}, {transform_indices = @transform_3, window_bounds = array<i64: 128, 16>}]} {
    %c0 = arith.constant 0 : index
    %c0_0 = arith.constant 0 : index
    %0 = vector.load %arg1[%c0, %c0_0] : memref<128x16xf32, #tpu.memory_space<vmem>>, vector<128x16xf32>
    %c0_1 = arith.constant 0 : index
    %c0_2 = arith.constant 0 : index
    %1 = vector.load %arg2[%c0_1, %c0_2] : memref<16x16xf32, #tpu.memory_space<vmem>>, vector<16x16xf32>
    %cst = arith.constant dense<0.000000e+00> : vector<128x16xf32>
    %2 = tpu.matmul %0, %1, %cst {dimension_numbers = #tpu.dot_dimension_numbers<[1], [0], [0], [1], [0, 0, 1, 1], [], []>} : vector<128x16xf32>, vector<16x16xf32>, vector<128x16xf32> -> vector<128x16xf32>
    %c0_3 = arith.constant 0 : index
    %c0_4 = arith.constant 0 : index
    %3 = vector.load %arg3[%c0_3, %c0_4] : memref<1x16xf32, #tpu.memory_space<vmem>>, vector<1x16xf32>
    %4 = vector.broadcast %3 : vector<1x16xf32> to vector<128x16xf32>
    %5 = arith.addf %2, %4 : vector<128x16xf32>
    %c0_5 = arith.constant 0 : index
    %c0_6 = arith.constant 0 : index
    %6 = vector.load %arg4[%c0_5, %c0_6] : memref<128x16xf32, #tpu.memory_space<vmem>>, vector<128x16xf32>
    tpu.vector_store %arg4[%c0_5, %c0_6], %5 {strides = array<i32>} : memref<128x16xf32, #tpu.memory_space<vmem>>, vector<128x16xf32>,
    return
  }
  func.func @transform_0(%arg0: i32) -> (i32, i32) {
    %c0_i32 = arith.constant 0 : i32
    %c0_i32_0 = arith.constant 0 : i32
    return %arg0, %c0_i32 : i32, i32
  }
  func.func @transform_1(%arg0: i32) -> (i32, i32) {
    %c0_i32 = arith.constant 0 : i32
    %c0_i32_0 = arith.constant 0 : i32
    %c0_i32_1 = arith.constant 0 : i32
    return %c0_i32, %c0_i32_0 : i32, i32
  }
  func.func @transform_2(%arg0: i32) -> (i32, i32) {
    %c0_i32 = arith.constant 0 : i32
    %c0_i32_0 = arith.constant 0 : i32
    %c0_i32_1 = arith.constant 0 : i32
    return %c0_i32, %c0_i32_0 : i32, i32
  }
  func.func @transform_3(%arg0: i32) -> (i32, i32) {
    %c0_i32 = arith.constant 0 : i32
    %c0_i32_0 = arith.constant 0 : i32
    return %arg0, %c0_i32 : i32, i32
  }
}

</mosaic_0001>

<bundles_post_ra>
// kernel: tpu_custom_call.1
= control target key start
LH: loop header
LB: loop body
LE: loop exit
PB: predicated region body
PF: predicated region fallthrough
CT: control target
= control target key end

     0   :  { %vm36_vm0 = vcmask 130048   ;;  %s350_s1 = inlined_call_operand.vmem [shape: f32[16,16], index: 1, kind: input, shape index: {}]   ;;  %s351_s0 = inlined_call_operand.vmem [shape: f32[128,16], index: 0, kind: input, shape index: {}]   ;;  %s352_s2 = inlined_call_operand.vmem [shape: f32[1,16], index: 2, kind: input, shape index: {}]   ;;  %s353_s3 = inlined_call_operand.vmem [shape: f32[128,16], index: 3, kind: output, shape index: {}]  }
   0x1   :  { %v31_v0 = vld [vmem:[%s350_s1 + $0x8] sm:$0xff]  ;;  %v30_v1 = vld [vmem:[%s350_s1] sm:$0xff]  ;;  %v24_v10 = vld [vmem:[%s351_s0 + $0x50] sm:$0xff] }
   0x2   :  { %187 = vmatpush.msra.mxu2 %v31_v0  ;;  %188 = vmatpush.msra.mxu3 %v31_v0  ;;  %v22_v2 = vld [vmem:[%s351_s0 + $0x40] sm:$0xff]  ;;  %v23_v6 = vld [vmem:[%s351_s0 + $0x48] sm:$0xff]  ;;  %v28_v11 = vld [vmem:[%s351_s0 + $0x70] sm:$0xff] }
   0x3   :  { %v26_v3 = vld [vmem:[%s351_s0 + $0x60] sm:$0xff]  ;;  %99 = vmatpush.msra.mxu0 %v31_v0  ;;  %186 = vmatpush.msra.mxu1 %v31_v0  ;;  %v27_v7 = vld [vmem:[%s351_s0 + $0x68] sm:$0xff]  ;;  %v16_v12 = vld [vmem:[%s351_s0 + $0x10] sm:$0xff] }
   0x4   :  { %190 = vmatpush.msra.mxu2 %v30_v1  ;;  %191 = vmatpush.msra.mxu3 %v30_v1  ;;  %v14_v4 = vld [vmem:[%s351_s0] sm:$0xff]  ;;  %v15_v8 = vld [vmem:[%s351_s0 + $0x8] sm:$0xff]  ;;  %v20_v13 = vld [vmem:[%s351_s0 + $0x30] sm:$0xff] }
   0x5   :  { %v18_v5 = vld [vmem:[%s351_s0 + $0x20] sm:$0xff]  ;;  %178 = vmatmul.msk.f32.vlgmr.msra.gmra.mxu2 %vm36_vm0, %v22_v2  ;;  %182 = vmatmul.msk.f32.vlgmr.msra.gmra.mxu3 %vm36_vm0, %v26_v3  ;;  %v19_v9 = vld [vmem:[%s351_s0 + $0x28] sm:$0xff]  ;;  %v25_v14 = vld [vmem:[%s351_s0 + $0x58] sm:$0xff] }
   0x6   :  { %100 = vmatpush.msra.mxu0 %v30_v1  ;;  %189 = vmatpush.msra.mxu1 %v30_v1  ;;  %v29_v15 = vld [vmem:[%s351_s0 + $0x78] sm:$0xff]  ;;  %v192_v18 = vld [vmem:[%s352_s2] ss:$0 sm:$0xff] }
   0x7   :  { %170 = vmatmul.msk.f32.vlgmr.msra.gmra.mxu0 %vm36_vm0, %v14_v4  ;;  %174 = vmatmul.msk.f32.vlgmr.msra.gmra.mxu1 %vm36_vm0, %v18_v5  ;;  %v17_v16 = vld [vmem:[%s351_s0 + $0x18] sm:$0xff] }
   0x8   :  { %v21_v17 = vld [vmem:[%s351_s0 + $0x38] sm:$0xff] }
   0xd   :  { %179 = vmatmul.msk.f32.gmra.mxu2 %vm36_vm0, %v23_v6  ;;  %183 = vmatmul.msk.f32.gmra.mxu3 %vm36_vm0, %v27_v7 }
   0xf   :  { %171 = vmatmul.msk.f32.gmra.mxu0 %vm36_vm0, %v15_v8  ;;  %175 = vmatmul.msk.f32.gmra.mxu1 %vm36_vm0, %v19_v9 }
  0x15   :  { %180 = vmatmul.msk.f32.gmra.mxu2 %vm36_vm0, %v24_v10  ;;  %184 = vmatmul.msk.f32.gmra.mxu3 %vm36_vm0, %v28_v11 }
  0x17   :  { %172 = vmatmul.msk.f32.gmra.mxu0 %vm36_vm0, %v16_v12  ;;  %176 = vmatmul.msk.f32.gmra.mxu1 %vm36_vm0, %v20_v13 }
  0x1d   :  { %181 = vmatmul.msk.f32.gmra.mxu2 %vm36_vm0, %v25_v14  ;;  %185 = vmatmul.msk.f32.gmra.mxu3 %vm36_vm0, %v29_v15 }
  0x1f   :  { %173 = vmatmul.msk.f32.gmra.mxu0 %vm36_vm0, %v17_v16  ;;  %177 = vmatmul.msk.f32.gmra.mxu1 %vm36_vm0, %v21_v17 }
  0x84   :  { %v102_v19 = vpop.f32.mrf.mxu0  ;;  %v114_v20 = vpop.f32.mrf.mxu1 }
  0x85   :  { %v103_v21 = vadd.f32 %v192_v18, %v102_v19  ;;  %v115_v22 = vadd.f32 %v192_v18, %v114_v20 }
  0x87   :  { %150 = vst.msk [vmem:[%s353_s3] sm:$0xff] %vm36_vm0, %v103_v21 }
  0x88   :  { %154 = vst.msk [vmem:[%s353_s3 + $0x20] sm:$0xff] %vm36_vm0, %v115_v22  ;;  %v126_v23 = vpop.f32.mrf.mxu2  ;;  %v138_v24 = vpop.f32.mrf.mxu3 }
  0x89   :  { %v127_v25 = vadd.f32 %v192_v18, %v126_v23  ;;  %v139_v26 = vadd.f32 %v192_v18, %v138_v24 }
  0x8b   :  { %158 = vst.msk [vmem:[%s353_s3 + $0x40] sm:$0xff] %vm36_vm0, %v127_v25 }
  0x8c   :  { %162 = vst.msk [vmem:[%s353_s3 + $0x60] sm:$0xff] %vm36_vm0, %v139_v26  ;;  %v105_v27 = vpop.f32.mrf.mxu0  ;;  %v117_v28 = vpop.f32.mrf.mxu1 }
  0x8d   :  { %v106_v29 = vadd.f32 %v192_v18, %v105_v27  ;;  %v118_v30 = vadd.f32 %v192_v18, %v117_v28 }
  0x8f   :  { %151 = vst.msk [vmem:[%s353_s3 + $0x8] sm:$0xff] %vm36_vm0, %v106_v29 }
  0x90   :  { %155 = vst.msk [vmem:[%s353_s3 + $0x28] sm:$0xff] %vm36_vm0, %v118_v30  ;;  %v129_v31 = vpop.f32.mrf.mxu2  ;;  %v141_v32 = vpop.f32.mrf.mxu3 }
  0x91   :  { %v130_v33 = vadd.f32 %v192_v18, %v129_v31  ;;  %v142_v34 = vadd.f32 %v192_v18, %v141_v32 }
  0x93   :  { %159 = vst.msk [vmem:[%s353_s3 + $0x48] sm:$0xff] %vm36_vm0, %v130_v33 }
  0x94   :  { %163 = vst.msk [vmem:[%s353_s3 + $0x68] sm:$0xff] %vm36_vm0, %v142_v34  ;;  %v108_v35 = vpop.f32.mrf.mxu0  ;;  %v120_v36 = vpop.f32.mrf.mxu1 }
  0x95   :  { %v109_v37 = vadd.f32 %v192_v18, %v108_v35  ;;  %v121_v38 = vadd.f32 %v192_v18, %v120_v36 }
  0x97   :  { %152 = vst.msk [vmem:[%s353_s3 + $0x10] sm:$0xff] %vm36_vm0, %v109_v37 }
  0x98   :  { %156 = vst.msk [vmem:[%s353_s3 + $0x30] sm:$0xff] %vm36_vm0, %v121_v38  ;;  %v132_v39 = vpop.f32.mrf.mxu2  ;;  %v144_v40 = vpop.f32.mrf.mxu3 }
  0x99   :  { %v133_v41 = vadd.f32 %v192_v18, %v132_v39  ;;  %v145_v42 = vadd.f32 %v192_v18, %v144_v40 }
  0x9b   :  { %160 = vst.msk [vmem:[%s353_s3 + $0x50] sm:$0xff] %vm36_vm0, %v133_v41 }
  0x9c   :  { %164 = vst.msk [vmem:[%s353_s3 + $0x70] sm:$0xff] %vm36_vm0, %v145_v42  ;;  %v111_v43 = vpop.f32.mrf.mxu0  ;;  %v123_v44 = vpop.f32.mrf.mxu1 }
  0x9d   :  { %v112_v45 = vadd.f32 %v192_v18, %v111_v43  ;;  %v124_v46 = vadd.f32 %v192_v18, %v123_v44 }
  0x9f   :  { %153 = vst.msk [vmem:[%s353_s3 + $0x18] sm:$0xff] %vm36_vm0, %v112_v45 }
  0xa0   :  { %157 = vst.msk [vmem:[%s353_s3 + $0x38] sm:$0xff] %vm36_vm0, %v124_v46  ;;  %v135_v47 = vpop.f32.mrf.mxu2  ;;  %v147_v48 = vpop.f32.mrf.mxu3 }
  0xa1   :  { %v136_v49 = vadd.f32 %v192_v18, %v135_v47  ;;  %v148_v50 = vadd.f32 %v192_v18, %v147_v48 }
  0xa3   :  { %161 = vst.msk [vmem:[%s353_s3 + $0x58] sm:$0xff] %vm36_vm0, %v136_v49 }
  0xa4   :  { %165 = vst.msk [vmem:[%s353_s3 + $0x78] sm:$0xff] %vm36_vm0, %v148_v50 }

</bundles_post_ra>
